<compile_context>
chip_gen: v7x
topology: tpu7x:2x2x1
jax: 0.10.0
libtpu: 0.0.40
codegen_flags: <defaults>
</compile_context>

<pallas_src>
import jax
import jax.numpy as jnp
from jax.experimental import pallas as pl
from jax.experimental.pallas import tpu as pltpu


def _leaky_relu(x, negative_slope=0.01):
    # matches torch.nn.functional.leaky_relu default slope
    return jnp.where(x > 0, x, negative_slope * x)


def qnetwork_kernel(x_ref, w0_ref, b0_ref, w1_ref, b1_ref, w2_ref, b2_ref, out_ref):
    # Fused forward for one batch tile: two hidden Linear+leaky_relu, final Linear.
    # Matmul inputs are bf16 (MXU-native), accumulation + elementwise math in f32.
    x = x_ref[...].astype(jnp.bfloat16)

    h = jnp.dot(x, w0_ref[...], preferred_element_type=jnp.float32) + b0_ref[...]
    h = _leaky_relu(h)

    h = jnp.dot(h.astype(jnp.bfloat16), w1_ref[...],
                preferred_element_type=jnp.float32) + b1_ref[...]
    h = _leaky_relu(h)

    out = jnp.dot(h.astype(jnp.bfloat16), w2_ref[...],
                  preferred_element_type=jnp.float32) + b2_ref[...]
    out_ref[...] = out.astype(out_ref.dtype)


def _round_up(x, m):
    return ((x + m - 1) // m) * m


def qnetwork_forward(state, params, *, batch_tile=256):
    """state: [B, state_size] f32; params: list of (W[in,out] f32, b[1,out] f32)."""
    (w0, b0), (w1, b1), (w2, b2) = params
    B, S = state.shape
    H0 = w0.shape[1]
    H1 = w1.shape[1]
    A = w2.shape[1]

    # Lane-dense output: pad last layer to a multiple of 128 output lanes.
    LANE = 128
    A_pad = _round_up(A, LANE)
    w2p = jnp.zeros((H1, A_pad), jnp.float32).at[:, :A].set(w2)
    b2p = jnp.zeros((1, A_pad), jnp.float32).at[:, :A].set(b2)

    # bf16 weights for the MXU (halves weight DMA traffic); biases stay f32.
    w0b = w0.astype(jnp.bfloat16)
    w1b = w1.astype(jnp.bfloat16)
    w2b = w2p.astype(jnp.bfloat16)

    # Batch tiling: multiple of 8 sublanes, capped for VMEM headroom (v7x: 64 MiB).
    TB = min(batch_tile, _round_up(max(B, 1), 8))
    B_pad = _round_up(B, TB)
    if B_pad != B:
        state = jnp.pad(state, ((0, B_pad - B), (0, 0)))

    grid = (B_pad // TB,)

    flops = 2 * B_pad * (S * H0 + H0 * H1 + H1 * A_pad)
    bytes_accessed = (
        B_pad * S * 4                      # x (f32 in HBM)
        + (S * H0 + H0 * H1 + H1 * A_pad) * 2   # bf16 weights
        + (H0 + H1 + A_pad) * 4            # f32 biases
        + B_pad * A_pad * 4                # f32 output
    )

    out = pl.pallas_call(
        qnetwork_kernel,
        out_shape=jax.ShapeDtypeStruct((B_pad, A_pad), jnp.float32),
        grid=grid,
        in_specs=[
            pl.BlockSpec((TB, S), lambda i: (i, 0)),     # x: tiled over batch
            pl.BlockSpec((S, H0), lambda i: (0, 0)),     # weights: VMEM-resident
            pl.BlockSpec((1, H0), lambda i: (0, 0)),
            pl.BlockSpec((H0, H1), lambda i: (0, 0)),
            pl.BlockSpec((1, H1), lambda i: (0, 0)),
            pl.BlockSpec((H1, A_pad), lambda i: (0, 0)),
            pl.BlockSpec((1, A_pad), lambda i: (0, 0)),
        ],
        out_specs=pl.BlockSpec((TB, A_pad), lambda i: (i, 0)),
        compiler_params=pltpu.CompilerParams(
            dimension_semantics=("parallel",),
        ),
        cost_estimate=pl.CostEstimate(
            flops=flops, bytes_accessed=bytes_accessed, transcendentals=0),
    )(state, w0b, b0, w1b, b1, w2b, b2p)

    return out[:B, :A]


def init_params(key, state_size, action_size, fc_layers=(64, 64)):
    """Deterministic init mirroring nn.Linear default: U(-1/sqrt(fan_in), 1/sqrt(fan_in))."""
    layer_sizes = [state_size] + list(fc_layers) + [action_size]
    params = []
    for in_f, out_f in zip(layer_sizes, layer_sizes[1:]):
        key, kw, kb = jax.random.split(key, 3)
        bound = 1.0 / jnp.sqrt(jnp.float32(in_f))
        w = jax.random.uniform(kw, (in_f, out_f), jnp.float32, -bound, bound)
        b = jax.random.uniform(kb, (1, out_f), jnp.float32, -bound, bound)
        params.append((w, b))
    return params


def reference_forward(state, params):
    x = state
    for w, b in params[:-1]:
        x = _leaky_relu(x @ w + b)
    w, b = params[-1]
    return x @ w + b


if __name__ == "__main__":
    key = jax.random.PRNGKey(0)
    batch = 8
    state_size = 16
    action_size = 4

    k_params, k_state = jax.random.split(key)
    params = init_params(k_params, state_size, action_size, fc_layers=(64, 64))
    state = jax.random.normal(k_state, (batch, state_size), jnp.float32)

    out = qnetwork_forward(state, params)
    jax.block_until_ready(out)

    ref = reference_forward(state, params)
    assert out.shape == (batch, action_size)
    # bf16 matmul inputs with f32 accumulation -> slightly looser tolerance vs f32 ref.
    assert jnp.allclose(out, ref, atol=5e-2, rtol=5e-2)

    print("KERNEL_OK")
</pallas_src>

<mosaic_0001>
module attributes {stable_mosaic.version = 11 : i64} {
  func.func @qnetwork_kernel(%arg0: i32, %arg1: memref<8x16xf32, #tpu.memory_space<vmem>>, %arg2: memref<16x64xbf16, #tpu.memory_space<vmem>>, %arg3: memref<1x64xf32, #tpu.memory_space<vmem>>, %arg4: memref<64x64xbf16, #tpu.memory_space<vmem>>, %arg5: memref<1x64xf32, #tpu.memory_space<vmem>>, %arg6: memref<64x128xbf16, #tpu.memory_space<vmem>>, %arg7: memref<1x128xf32, #tpu.memory_space<vmem>>, %arg8: memref<8x128xf32, #tpu.memory_space<vmem>>) attributes {dimension_semantics = [#tpu.dimension_semantics<parallel>], iteration_bounds = array<i64: 1>, scalar_prefetch = 0 : i64, scratch_operands = 0 : i64, tpu.core_type = #tpu.core_type<tc>, window_params = [{transform_indices = @transform_0, window_bounds = array<i64: 8, 16>}, {pipeline_mode = #tpu.pipeline_mode<synchronous>, transform_indices = @transform_1, window_bounds = array<i64: 16, 64>}, {pipeline_mode = #tpu.pipeline_mode<synchronous>, transform_indices = @transform_2, window_bounds = array<i64: 1, 64>}, {pipeline_mode = #tpu.pipeline_mode<synchronous>, transform_indices = @transform_3, window_bounds = array<i64: 64, 64>}, {pipeline_mode = #tpu.pipeline_mode<synchronous>, transform_indices = @transform_4, window_bounds = array<i64: 1, 64>}, {pipeline_mode = #tpu.pipeline_mode<synchronous>, transform_indices = @transform_5, window_bounds = array<i64: 64, 128>}, {pipeline_mode = #tpu.pipeline_mode<synchronous>, transform_indices = @transform_6, window_bounds = array<i64: 1, 128>}, {transform_indices = @transform_7, window_bounds = array<i64: 8, 128>}]} {
    %c0 = arith.constant 0 : index
    %c0_0 = arith.constant 0 : index
    %0 = vector.load %arg1[%c0, %c0_0] : memref<8x16xf32, #tpu.memory_space<vmem>>, vector<8x16xf32>
    %1 = arith.truncf %0 : vector<8x16xf32> to vector<8x16xbf16>
    %c0_1 = arith.constant 0 : index
    %c0_2 = arith.constant 0 : index
    %2 = vector.load %arg2[%c0_1, %c0_2] : memref<16x64xbf16, #tpu.memory_space<vmem>>, vector<16x64xbf16>
    %cst = arith.constant dense<0.000000e+00> : vector<8x64xf32>
    %3 = tpu.matmul %1, %2, %cst {dimension_numbers = #tpu.dot_dimension_numbers<[1], [0], [0], [1], [0, 0, 1, 1], [], []>} : vector<8x16xbf16>, vector<16x64xbf16>, vector<8x64xf32> -> vector<8x64xf32>
    %c0_3 = arith.constant 0 : index
    %c0_4 = arith.constant 0 : index
    %4 = vector.load %arg3[%c0_3, %c0_4] : memref<1x64xf32, #tpu.memory_space<vmem>>, vector<1x64xf32>
    %5 = vector.broadcast %4 : vector<1x64xf32> to vector<8x64xf32>
    %6 = arith.addf %3, %5 : vector<8x64xf32>
    %cst_5 = arith.constant 0.000000e+00 : f32
    %7 = vector.broadcast %cst_5 : f32 to vector<8x64xf32>
    %8 = arith.cmpf ogt, %6, %7 : vector<8x64xf32>
    %cst_6 = arith.constant 0.00999999977 : f32
    %9 = vector.broadcast %cst_6 : f32 to vector<8x64xf32>
    %10 = arith.mulf %9, %6 : vector<8x64xf32>
    %11 = arith.select %8, %6, %10 : vector<8x64xi1>, vector<8x64xf32>
    %12 = arith.truncf %11 : vector<8x64xf32> to vector<8x64xbf16>
    %c0_7 = arith.constant 0 : index
    %c0_8 = arith.constant 0 : index
    %13 = vector.load %arg4[%c0_7, %c0_8] : memref<64x64xbf16, #tpu.memory_space<vmem>>, vector<64x64xbf16>
    %cst_9 = arith.constant dense<0.000000e+00> : vector<8x64xf32>
    %14 = tpu.matmul %12, %13, %cst_9 {dimension_numbers = #tpu.dot_dimension_numbers<[1], [0], [0], [1], [0, 0, 1, 1], [], []>} : vector<8x64xbf16>, vector<64x64xbf16>, vector<8x64xf32> -> vector<8x64xf32>
    %c0_10 = arith.constant 0 : index
    %c0_11 = arith.constant 0 : index
    %15 = vector.load %arg5[%c0_10, %c0_11] : memref<1x64xf32, #tpu.memory_space<vmem>>, vector<1x64xf32>
    %16 = vector.broadcast %15 : vector<1x64xf32> to vector<8x64xf32>
    %17 = arith.addf %14, %16 : vector<8x64xf32>
    %cst_12 = arith.constant 0.000000e+00 : f32
    %18 = vector.broadcast %cst_12 : f32 to vector<8x64xf32>
    %19 = arith.cmpf ogt, %17, %18 : vector<8x64xf32>
    %cst_13 = arith.constant 0.00999999977 : f32
    %20 = vector.broadcast %cst_13 : f32 to vector<8x64xf32>
    %21 = arith.mulf %20, %17 : vector<8x64xf32>
    %22 = arith.select %19, %17, %21 : vector<8x64xi1>, vector<8x64xf32>
    %23 = arith.truncf %22 : vector<8x64xf32> to vector<8x64xbf16>
    %c0_14 = arith.constant 0 : index
    %c0_15 = arith.constant 0 : index
    %24 = vector.load %arg6[%c0_14, %c0_15] : memref<64x128xbf16, #tpu.memory_space<vmem>>, vector<64x128xbf16>
    %cst_16 = arith.constant dense<0.000000e+00> : vector<8x128xf32>
    %25 = tpu.matmul %23, %24, %cst_16 {dimension_numbers = #tpu.dot_dimension_numbers<[1], [0], [0], [1], [0, 0, 1, 1], [], []>} : vector<8x64xbf16>, vector<64x128xbf16>, vector<8x128xf32> -> vector<8x128xf32>
    %c0_17 = arith.constant 0 : index
    %c0_18 = arith.constant 0 : index
    %26 = vector.load %arg7[%c0_17, %c0_18] : memref<1x128xf32, #tpu.memory_space<vmem>>, vector<1x128xf32>
    %27 = vector.broadcast %26 : vector<1x128xf32> to vector<8x128xf32>
    %28 = arith.addf %25, %27 : vector<8x128xf32>
    %c0_19 = arith.constant 0 : index
    %c0_20 = arith.constant 0 : index
    %29 = vector.load %arg8[%c0_19, %c0_20] : memref<8x128xf32, #tpu.memory_space<vmem>>, vector<8x128xf32>
    tpu.vector_store %arg8[%c0_19, %c0_20], %28 {strides = array<i32>} : memref<8x128xf32, #tpu.memory_space<vmem>>, vector<8x128xf32>,
    return
  }
  func.func @transform_0(%arg0: i32) -> (i32, i32) {
    %c0_i32 = arith.constant 0 : i32
    %c0_i32_0 = arith.constant 0 : i32
    return %arg0, %c0_i32 : i32, i32
  }
  func.func @transform_1(%arg0: i32) -> (i32, i32) {
    %c0_i32 = arith.constant 0 : i32
    %c0_i32_0 = arith.constant 0 : i32
    %c0_i32_1 = arith.constant 0 : i32
    return %c0_i32, %c0_i32_0 : i32, i32
  }
  func.func @transform_2(%arg0: i32) -> (i32, i32) {
    %c0_i32 = arith.constant 0 : i32
    %c0_i32_0 = arith.constant 0 : i32
    %c0_i32_1 = arith.constant 0 : i32
    return %c0_i32, %c0_i32_0 : i32, i32
  }
  func.func @transform_3(%arg0: i32) -> (i32, i32) {
    %c0_i32 = arith.constant 0 : i32
    %c0_i32_0 = arith.constant 0 : i32
    %c0_i32_1 = arith.constant 0 : i32
    return %c0_i32, %c0_i32_0 : i32, i32
  }
  func.func @transform_4(%arg0: i32) -> (i32, i32) {
    %c0_i32 = arith.constant 0 : i32
    %c0_i32_0 = arith.constant 0 : i32
    %c0_i32_1 = arith.constant 0 : i32
    return %c0_i32, %c0_i32_0 : i32, i32
  }
  func.func @transform_5(%arg0: i32) -> (i32, i32) {
    %c0_i32 = arith.constant 0 : i32
    %c0_i32_0 = arith.constant 0 : i32
    %c0_i32_1 = arith.constant 0 : i32
    return %c0_i32, %c0_i32_0 : i32, i32
  }
  func.func @transform_6(%arg0: i32) -> (i32, i32) {
    %c0_i32 = arith.constant 0 : i32
    %c0_i32_0 = arith.constant 0 : i32
    %c0_i32_1 = arith.constant 0 : i32
    return %c0_i32, %c0_i32_0 : i32, i32
  }
  func.func @transform_7(%arg0: i32) -> (i32, i32) {
    %c0_i32 = arith.constant 0 : i32
    %c0_i32_0 = arith.constant 0 : i32
    return %arg0, %c0_i32 : i32, i32
  }
}

</mosaic_0001>

<bundles_post_ra>
// kernel: tpu_custom_call.1
= control target key start
LH: loop header
LB: loop body
LE: loop exit
PB: predicated region body
PF: predicated region fallthrough
CT: control target
= control target key end

     0   :  { %12 = vsyncpa [#allocation3], 0  ;;  %s655_s0 = inlined_call_operand.hbm [shape: f32[8,16], index: 0, kind: input, shape index: {}]   ;;  %s656_s1 = inlined_call_operand.hbm [shape: bf16[16,64], index: 1, kind: input, shape index: {}]   ;;  %s657_s2 = inlined_call_operand.vmem [shape: f32[1,64], index: 2, kind: input, shape index: {}]   ;;  %s658_s3 = inlined_call_operand.hbm [shape: bf16[64,64], index: 3, kind: input, shape index: {}]   ;;  %s659_s4 = inlined_call_operand.vmem [shape: f32[1,64], index: 4, kind: input, shape index: {}]   ;;  %s660_s5 = inlined_call_operand.hbm [shape: bf16[64,128], index: 5, kind: input, shape index: {}]   ;;  %s661_s6 = inlined_call_operand.vmem [shape: f32[1,128], index: 6, kind: input, shape index: {}]   ;;  %s662_s7 = inlined_call_operand.hbm [shape: f32[8,128], index: 7, kind: output, shape index: {}]  }
   0x1   :  { %13 = vsyncpa [#allocation6], 0 }
   0x2   :  { %14 = vsyncpa [#allocation9], 0 }
   0x3   :  { %15 = vsyncpa [#allocation4], 0  ;;  %s526_s24 = smov [#allocation5]   ;;  %s408_s28 = scalar_lea.hbm %s656_s1, 128 }
   0x4   :  { %s31_s25 = sshll.u32 %s526_s24, 4  ;;  %p409_p0 = scmp.ne.s32.totalorder %s656_s1, %s408_s28  ;;  %s32_s25 = int_to_ptr.vmem [resolvable:$true] %s31_s25 }
   0x5   :  { %p412_p1 = scmp.lt.u32.totalorder %s408_s28, %s656_s1 }
   0x7   :  { %p414_p2 = pnand %p412_p1, %p409_p0 }
   0x9   :  { %417 = shalt.err (!%p414_p2)
}
   0xa   :  { %s418_s10 = scalar_lea.vmem %s32_s25, 128  ;;  %p423_p4 = scmp.lt.s32.totalorder %s32_s25, %s32_s25 }
   0xb   :  { %p419_p3 = scmp.ne.s32.totalorder %s32_s25, %s418_s10  ;;  %p424_p5 = scmp.lt.s32.totalorder %s418_s10, %s418_s10 }
   0xd   :  { %p425_p6 = por %p424_p5, %p423_p4 }
   0xf   :  { %p426_p7 = pnand %p425_p6, %p419_p3 }
  0x11   :  { %429 = shalt.err (!%p426_p7)
}
  0x12   :  { %s527_s11 = smov 64   ;;  %s528_s12 = smov 4  }
  0x13   :  { %37 = dma.hbm_to_vmem [thread:$0]  %s656_s1, 128, %s32_s25, [#allocation6], %s527_s11, %s527_s11, %s528_s12  }
  0x14   :  { %s529_s15 = smov [#allocation2]   ;;  %s530_s17 = smov [#allocation7]  }
  0x15   :  { %s22_s16 = sshll.u32 %s529_s15, 4  ;;  %s45_s18 = sshll.u32 %s530_s17, 4  ;;  %s23_s16 = int_to_ptr.vmem [resolvable:$true] %s22_s16  ;;  %s46_s18 = int_to_ptr.vmem [resolvable:$true] %s45_s18 }
  0x16   :  { %s430_s21 = scalar_lea.hbm %s655_s0, 128 }
  0x17   :  { %p431_p8 = scmp.ne.s32.totalorder %s655_s0, %s430_s21  ;;  %p434_p9 = scmp.lt.u32.totalorder %s430_s21, %s655_s0 }
  0x19   :  { %p436_p10 = pnand %p434_p9, %p431_p8 }
  0x1b   :  { %439 = shalt.err (!%p436_p10)
}
  0x1c   :  { %s440_s1 = scalar_lea.vmem %s23_s16, 128  ;;  %p445_p12 = scmp.lt.s32.totalorder %s23_s16, %s23_s16 }
  0x1d   :  { %p441_p11 = scmp.ne.s32.totalorder %s23_s16, %s440_s1  ;;  %p446_p13 = scmp.lt.s32.totalorder %s440_s1, %s440_s1 }
  0x1f   :  { %p447_p0 = por %p446_p13, %p445_p12 }
  0x21   :  { %p448_p1 = pnand %p447_p0, %p441_p11 }
  0x23   :  { %451 = shalt.err (!%p448_p1)
}
  0x24   :  { %25 = dma.hbm_to_vmem [thread:$0]  %s655_s0, 128, %s23_s16, [#allocation3]  }
  0x25   :  { %s452_s30 = scalar_lea.hbm %s658_s3, 512 }
  0x26   :  { %p453_p2 = scmp.ne.s32.totalorder %s658_s3, %s452_s30  ;;  %p456_p3 = scmp.lt.u32.totalorder %s452_s30, %s658_s3 }
  0x28   :  { %p458_p4 = pnand %p456_p3, %p453_p2 }
  0x2a   :  { %461 = shalt.err (!%p458_p4)
}
  0x2b   :  { %s462_s14 = scalar_lea.vmem %s46_s18, 512  ;;  %p467_p6 = scmp.lt.s32.totalorder %s46_s18, %s46_s18 }
  0x2c   :  { %p463_p5 = scmp.ne.s32.totalorder %s46_s18, %s462_s14  ;;  %p468_p7 = scmp.lt.s32.totalorder %s462_s14, %s462_s14 }
  0x2e   :  { %p469_p8 = por %p468_p7, %p467_p6 }
  0x30   :  { %p470_p9 = pnand %p469_p8, %p463_p5 }
  0x32   :  { %473 = shalt.err (!%p470_p9)
}
  0x33   :  { %51 = dma.hbm_to_vmem [thread:$0]  %s658_s3, 512, %s46_s18, [#allocation6], %s527_s11, %s527_s11, %s528_s12  }
  0x34   :  { %s531_s16 = smov [#allocation8]   ;;  %s474_s21 = scalar_lea.hbm %s660_s5, 512 }
  0x35   :  { %s59_s17 = sshll.u32 %s531_s16, 4  ;;  %p475_p10 = scmp.ne.s32.totalorder %s660_s5, %s474_s21  ;;  %s60_s17 = int_to_ptr.vmem [resolvable:$true] %s59_s17 }
  0x36   :  { %p478_p11 = scmp.lt.u32.totalorder %s474_s21, %s660_s5 }
  0x38   :  { %p480_p12 = pnand %p478_p11, %p475_p10 }
  0x3a   :  { %483 = shalt.err (!%p480_p12)
}
  0x3b   :  { %s484_s1 = scalar_lea.vmem %s60_s17, 512  ;;  %p489_p0 = scmp.lt.s32.totalorder %s60_s17, %s60_s17 }
  0x3c   :  { %p485_p13 = scmp.ne.s32.totalorder %s60_s17, %s484_s1  ;;  %p490_p1 = scmp.lt.s32.totalorder %s484_s1, %s484_s1 }
  0x3e   :  { %p491_p2 = por %p490_p1, %p489_p0 }
  0x40   :  { %p492_p3 = pnand %p491_p2, %p485_p13 }
  0x42   :  { %495 = shalt.err (!%p492_p3)
}
  0x43   :  { %65 = dma.hbm_to_vmem [thread:$0]  %s660_s5, 512, %s60_s17, [#allocation9], %s527_s11, %s527_s11, %s528_s12  }
  0x44   :  { %518 = dma.done.wait [#allocation3], 128  }
  0x45   :  { %519 = vsyncadd [#allocation3], 4294967168 }
  0x46   :  { %520 = dma.done.wait [#allocation6], 640  }
  0x47   :  { %521 = vsyncadd [#allocation6], 4294966656 }
  0x48   :  { %522 = dma.done.wait [#allocation9], 512  }
  0x49   :  { %523 = vsyncadd [#allocation9], 4294966784  ;;  %v532_v0 = vmov 0.0   ;;  %vm533_vm0 = vmmov 0   ;;  %v399_v1 = vld [vmem:[#allocation5] sm:$0xff]   ;;  %v81_v2 = vld [vmem:[#allocation2] sm:$0xff] }
  0x4a   :  { %360 = vmatprep.subr.bf16.mxu0 %v532_v0  ;;  %362 = vmatprep.mubr.msk.bf16.mxu0 %vm533_vm0, %v532_v0  ;;  %v82_v3 = vpack.c.bf16 %v81_v2, %v81_v2  ;;  %vm98_vm1 = vcmask 130048   ;;  %v400_v4 = vld [vmem:[#allocation7] sm:$0xff]   ;;  %v401_v5 = vld [vmem:[#allocation7 + $0x8] sm:$0xff]   ;;  %v402_v6 = vld [vmem:[#allocation7 + $0x10] sm:$0xff]   ;;  %vm185_vm3 = vcmask 523264   ;;  %s534_s28 = smov [#allocation10]  }
  0x4b   :  { %366 = vmatprep.subr.bf16.mxu1 %v532_v0  ;;  %374 = vmatprep.mubr.msk.bf16.mxu1 %vm533_vm0, %v532_v0  ;;  %v403_v7 = vld [vmem:[#allocation7 + $0x18] sm:$0xff]   ;;  %v404_v8 = vld [vmem:[#allocation8] sm:$0xff]   ;;  %v405_v9 = vld [vmem:[#allocation8 + $0x8] sm:$0xff]   ;;  %s322_s29 = sshll.u32 %s534_s28, 4  ;;  %s323_s29 = int_to_ptr.vmem [resolvable:$true] %s322_s29 }
  0x4c   :  { %361 = vmatpush3.bf16.msra.mxu0 %v399_v1  ;;  %367 = vmatpush3.bf16.msra.mxu1 %v400_v4  ;;  %v333_v10 = vld [vmem:[%s657_s2] ss:$0 sm:$0xff]  ;;  %v407_v20 = vld [vmem:[#allocation8 + $0x18] sm:$0xff]   ;;  %p501_p5 = scmp.lt.s32.totalorder %s323_s29, %s323_s29 }
  0x4d   :  { %378 = vmatprep.subr.bf16.mxu0 %v532_v0  ;;  %368 = vmatprep.subr.bf16.mxu1 %v532_v0  ;;  %v406_v19 = vld [vmem:[#allocation8 + $0x10] sm:$0xff]  }
  0x4e   :  { %v336_v21 = vld [vmem:[%s659_s4] ss:$0 sm:$0xff]  ;;  %s496_s4 = scalar_lea.vmem %s323_s29, 128 }
  0x4f   :  { %363 = vmatmul.mubr.msk.bf16.vlgmr.msra.gmra.mrb[0].mxu0 %vm98_vm1, %v82_v3  ;;  %v342_v30 = vld [vmem:[%s661_s6] ss:$0 sm:$0xff]  ;;  %p497_p4 = scmp.ne.s32.totalorder %s323_s29, %s496_s4  ;;  %p502_p6 = scmp.lt.s32.totalorder %s496_s4, %s496_s4 }
  0x50   :  { %386 = vmatprep.mubr.msk.bf16.mxu0 %vm533_vm0, %v532_v0  ;;  %369 = vmatpush3.bf16.msra.mxu1 %v401_v5 }
  0x51   :  { %370 = vmatprep.subr.bf16.mxu1 %v532_v0  ;;  %379 = vmatpush3.bf16.msra.mxu0 %v404_v8  ;;  %p503_p7 = por %p502_p6, %p501_p5 }
  0x52   :  { %380 = vmatprep.subr.bf16.mxu0 %v532_v0 }
  0x53   :  { %p504_p8 = pnand %p503_p7, %p497_p4 }
  0x54   :  { %371 = vmatpush3.bf16.msra.mxu1 %v402_v6 }
  0x55   :  { %372 = vmatprep.subr.bf16.mxu1 %v532_v0  ;;  %381 = vmatpush3.bf16.msra.mxu0 %v405_v9 }
  0x56   :  { %382 = vmatprep.subr.bf16.mxu0 %v532_v0 }
  0x58   :  { %373 = vmatpush3.bf16.msra.mxu1 %v403_v7 }
  0x59   :  { %383 = vmatpush3.bf16.msra.mxu0 %v406_v19 }
  0x5a   :  { %384 = vmatprep.subr.bf16.mxu0 %v532_v0 }
  0x5d   :  { %385 = vmatpush3.bf16.msra.mxu0 %v407_v20 }
 0x122   :  { %v136_v11 = vpop.f32.mrb[0].mxu0 }
 0x123   :  { %v137_v12 = vadd.f32 %v333_v10, %v136_v11  ;;  %v364_v13 = vpop.f32.mrb[1].mxu0 }
 0x124   :  { %v139_v14 = vpop.f32.mrb[2].mxu0 }
 0x125   :  { %vm142_vm2 = vcmp.gt.f32.partialorder %v137_v12, 0.0  ;;  %v143_v15 = vmul.f32 0.01, %v137_v12  ;;  %v365_v16 = vpop.f32.mrb[3].mxu0 }
 0x127   :  { %v144_v17 = vsel %vm142_vm2, %v137_v12, %v143_v15 }
 0x128   :  { %v145_v18 = vpack.c.bf16 %v144_v17, %v144_v17 }
 0x12a   :  { %375 = vmatmul.mubr.msk.bf16.vlgmr.msra.gmra.mrb[0].mxu1 %vm185_vm3, %v145_v18 }
 0x1fd   :  { %v223_v22 = vpop.f32.mrb[0].mxu1 }
 0x1fe   :  { %v224_v23 = vadd.f32 %v336_v21, %v223_v22  ;;  %v376_v24 = vpop.f32.mrb[1].mxu1 }
 0x1ff   :  { %v226_v25 = vpop.f32.mrb[2].mxu1 }
 0x200   :  { %vm229_vm4 = vcmp.gt.f32.partialorder %v224_v23, 0.0  ;;  %v230_v26 = vmul.f32 0.01, %v224_v23  ;;  %v377_v27 = vpop.f32.mrb[3].mxu1 }
 0x202   :  { %v231_v28 = vsel %vm229_vm4, %v224_v23, %v230_v26 }
 0x203   :  { %v232_v29 = vpack.c.bf16 %v231_v28, %v231_v28 }
 0x205   :  { %387 = vmatmul.mubr.msk.bf16.vlgmr.msra.gmra.mrb[4].mxu0 %vm185_vm3, %v232_v29 }
 0x2d8   :  { %v309_v31 = vpop.f32.mrb[4].mxu0 }
 0x2d9   :  { %v310_v32 = vadd.f32 %v342_v30, %v309_v31  ;;  %v388_v33 = vpop.f32.mrb[5].mxu0 }
 0x2da   :  { %v312_v34 = vpop.f32.mrb[6].mxu0 }
 0x2db   :  { %315 = vst [vmem:[#allocation10] sm:$0xff] %v310_v32  ;;  %v389_v35 = vpop.f32.mrb[7].mxu0 }
 0x2dc   :  { %507 = shalt.err (!%p504_p8)
}
 0x2dd   :  { %s508_s6 = scalar_lea.hbm %s662_s7, 128 }
 0x2de   :  { %p509_p9 = scmp.ne.s32.totalorder %s662_s7, %s508_s6  ;;  %p512_p10 = scmp.lt.u32.totalorder %s508_s6, %s662_s7 }
 0x2e0   :  { %p514_p11 = pnand %p512_p10, %p509_p9 }
 0x2e2   :  { %517 = shalt.err (!%p514_p11)
}
 0x2e3   :  { %325 = dma.vmem_to_hbm [thread:$0]  %s323_s29, 128, %s662_s7, [#allocation4]  }
 0x2e4   :  { %524 = dma.done.wait [#allocation4], 128  }
 0x2e5   :  { %525 = vsyncadd [#allocation4], 4294967168 }
 0x2e6   :  { %329 = vsyncpa [#allocation3], 1 }
 0x2e7   :  { %330 = vsyncpa [#allocation6], 1 }
 0x2e8   :  { %331 = vsyncpa [#allocation9], 1 }
 0x2e9   :  { %332 = vsyncpa [#allocation4], 1 }

</bundles_post_ra>
